<compile_context>
chip_gen: v7x
topology: tpu7x:2x2x1
jax: 0.10.0
libtpu: 0.0.40
codegen_flags: <defaults>
</compile_context>

<pallas_src>
import functools

import jax
import jax.numpy as jnp
from jax.experimental import pallas as pl
from jax.experimental.pallas import tpu as pltpu

INPUT_SIZE = 28
HIDDEN = 64
OUT = 10


def _rnn_kernel(x_ref, wih_ref, whh_ref, b_ref, wout_ref, bout_ref, out_ref,
                *, T, B):
    """Entire RNN forward in one kernel invocation.

    x_ref    : (T*B, I)  time-major, batch-padded inputs (row t*B + b = (t, b))
    wih_ref  : (I, H)    input->hidden weight (pre-transposed)
    whh_ref  : (H, H)    hidden->hidden weight (pre-transposed)
    b_ref    : (1, H)    combined bias (b_ih + b_hh)
    wout_ref : (H, O)    output linear weight (pre-transposed)
    bout_ref : (1, O)    output linear bias
    out_ref  : (B, O)    logits for the last time step
    """
    # Hoisted input projection: one MXU pass for all T time steps, bias folded in
    # (broadcast happens once, not per iteration).
    x_proj = (
        jnp.dot(x_ref[...], wih_ref[...], preferred_element_type=jnp.float32)
        + b_ref[...]
    )  # (T*B, H)

    whh = whh_ref[...]                                   # (H, H), loaded once
    h = jnp.zeros((B, whh.shape[1]), jnp.float32)        # (B, H)

    # Statically unrolled recurrence: only h @ W_hh -> tanh stays on the serial path.
    for t in range(T):
        h = jnp.tanh(
            x_proj[t * B:(t + 1) * B, :]
            + jnp.dot(h, whh, preferred_element_type=jnp.float32)
        )

    out_ref[...] = (
        jnp.dot(h, wout_ref[...], preferred_element_type=jnp.float32)
        + bout_ref[...]
    )


def rnn_forward(x_btf, w_ih, w_hh, b_ih, b_hh, w_out, b_out):
    """x_btf: (B, T, I) batch_first, like the PyTorch module.  Returns (B, 10)."""
    B, T, I = x_btf.shape
    H = w_ih.shape[0]
    O = w_out.shape[0]

    # Pad batch up to a full sublane tile (8) so per-step h rows and the output
    # store are unmasked; real rows are sliced back out below.
    B_pad = max(8, ((B + 7) // 8) * 8)

    x = x_btf.astype(jnp.float32)
    if B_pad != B:
        x = jnp.pad(x, ((0, B_pad - B), (0, 0), (0, 0)))
    # time-major, flattened: row t*B_pad + b  <->  (time t, batch b)
    x_tb = jnp.transpose(x, (1, 0, 2)).reshape(T * B_pad, I)

    # Pre-transpose weights so the kernel does plain row-major matmuls.
    wih_t = jnp.transpose(w_ih).astype(jnp.float32)      # (I, H)
    whh_t = jnp.transpose(w_hh).astype(jnp.float32)      # (H, H)
    b = (b_ih + b_hh).reshape(1, H).astype(jnp.float32)  # (1, H)
    wout_t = jnp.transpose(w_out).astype(jnp.float32)    # (H, O)
    bout = b_out.reshape(1, O).astype(jnp.float32)       # (1, O)

    kernel = functools.partial(_rnn_kernel, T=T, B=B_pad)

    out_pad = pl.pallas_call(
        kernel,
        out_shape=jax.ShapeDtypeStruct((B_pad, O), jnp.float32),
        grid=(1,),  # single invocation; all blocks are whole arrays in VMEM
        in_specs=[
            pl.BlockSpec((T * B_pad, I), lambda i: (0, 0)),  # x (time-major, flat)
            pl.BlockSpec((I, H), lambda i: (0, 0)),          # W_ih^T
            pl.BlockSpec((H, H), lambda i: (0, 0)),          # W_hh^T
            pl.BlockSpec((1, H), lambda i: (0, 0)),          # bias
            pl.BlockSpec((H, O), lambda i: (0, 0)),          # W_out^T
            pl.BlockSpec((1, O), lambda i: (0, 0)),          # b_out
        ],
        out_specs=pl.BlockSpec((B_pad, O), lambda i: (0, 0)),
        compiler_params=pltpu.CompilerParams(
            dimension_semantics=("arbitrary",)),
    )(x_tb, wih_t, whh_t, b, wout_t, bout)

    return out_pad[:B]


def _reference(x_btf, w_ih, w_hh, b_ih, b_hh, w_out, b_out):
    """Pure-JAX reference matching nn.RNN (tanh) + nn.Linear semantics."""
    B, T, I = x_btf.shape
    H = w_ih.shape[0]
    h = jnp.zeros((B, H), jnp.float32)
    for t in range(T):
        h = jnp.tanh(x_btf[:, t, :] @ w_ih.T + b_ih + h @ w_hh.T + b_hh)
    return h @ w_out.T + b_out


if __name__ == "__main__":
    key = jax.random.PRNGKey(0)
    kx, k1, k2, k3, k4, k5, k6 = jax.random.split(key, 7)

    B, T, I, H, O = 2, 8, INPUT_SIZE, HIDDEN, OUT
    scale = 1.0 / jnp.sqrt(H)

    x = jax.random.normal(kx, (B, T, I), dtype=jnp.float32)
    w_ih = jax.random.uniform(k1, (H, I), minval=-scale, maxval=scale, dtype=jnp.float32)
    w_hh = jax.random.uniform(k2, (H, H), minval=-scale, maxval=scale, dtype=jnp.float32)
    b_ih = jax.random.uniform(k3, (H,), minval=-scale, maxval=scale, dtype=jnp.float32)
    b_hh = jax.random.uniform(k4, (H,), minval=-scale, maxval=scale, dtype=jnp.float32)
    w_out = jax.random.uniform(k5, (O, H), minval=-scale, maxval=scale, dtype=jnp.float32)
    b_out = jax.random.uniform(k6, (O,), minval=-scale, maxval=scale, dtype=jnp.float32)

    out = rnn_forward(x, w_ih, w_hh, b_ih, b_hh, w_out, b_out)
    out = jax.block_until_ready(out)

    ref = _reference(x, w_ih, w_hh, b_ih, b_hh, w_out, b_out)
    assert out.shape == (B, O)
    assert jnp.allclose(out, ref, atol=1e-5, rtol=1e-5), "mismatch vs reference"

    print("KERNEL_OK")
</pallas_src>

<mosaic_0001>
module attributes {stable_mosaic.version = 11 : i64} {
  func.func @_rnn_kernel(%arg0: i32, %arg1: memref<64x28xf32, #tpu.memory_space<vmem>>, %arg2: memref<28x64xf32, #tpu.memory_space<vmem>>, %arg3: memref<64x64xf32, #tpu.memory_space<vmem>>, %arg4: memref<1x64xf32, #tpu.memory_space<vmem>>, %arg5: memref<64x10xf32, #tpu.memory_space<vmem>>, %arg6: memref<1x10xf32, #tpu.memory_space<vmem>>, %arg7: memref<8x10xf32, #tpu.memory_space<vmem>>) attributes {dimension_semantics = [#tpu.dimension_semantics<arbitrary>], iteration_bounds = array<i64: 1>, scalar_prefetch = 0 : i64, scratch_operands = 0 : i64, tpu.core_type = #tpu.core_type<tc>, window_params = [{pipeline_mode = #tpu.pipeline_mode<synchronous>, transform_indices = @transform_0, window_bounds = array<i64: 64, 28>}, {pipeline_mode = #tpu.pipeline_mode<synchronous>, transform_indices = @transform_1, window_bounds = array<i64: 28, 64>}, {pipeline_mode = #tpu.pipeline_mode<synchronous>, transform_indices = @transform_2, window_bounds = array<i64: 64, 64>}, {pipeline_mode = #tpu.pipeline_mode<synchronous>, transform_indices = @transform_3, window_bounds = array<i64: 1, 64>}, {pipeline_mode = #tpu.pipeline_mode<synchronous>, transform_indices = @transform_4, window_bounds = array<i64: 64, 10>}, {pipeline_mode = #tpu.pipeline_mode<synchronous>, transform_indices = @transform_5, window_bounds = array<i64: 1, 10>}, {pipeline_mode = #tpu.pipeline_mode<synchronous>, transform_indices = @transform_6, window_bounds = array<i64: 8, 10>}]} {
    %c0 = arith.constant 0 : index
    %c0_0 = arith.constant 0 : index
    %0 = vector.load %arg1[%c0, %c0_0] : memref<64x28xf32, #tpu.memory_space<vmem>>, vector<64x28xf32>
    %c0_1 = arith.constant 0 : index
    %c0_2 = arith.constant 0 : index
    %1 = vector.load %arg2[%c0_1, %c0_2] : memref<28x64xf32, #tpu.memory_space<vmem>>, vector<28x64xf32>
    %cst = arith.constant dense<0.000000e+00> : vector<64x64xf32>
    %2 = tpu.matmul %0, %1, %cst {dimension_numbers = #tpu.dot_dimension_numbers<[1], [0], [0], [1], [0, 0, 1, 1], [], []>} : vector<64x28xf32>, vector<28x64xf32>, vector<64x64xf32> -> vector<64x64xf32>
    %c0_3 = arith.constant 0 : index
    %c0_4 = arith.constant 0 : index
    %3 = vector.load %arg4[%c0_3, %c0_4] : memref<1x64xf32, #tpu.memory_space<vmem>>, vector<1x64xf32>
    %4 = vector.broadcast %3 : vector<1x64xf32> to vector<64x64xf32>
    %5 = arith.addf %2, %4 : vector<64x64xf32>
    %c0_5 = arith.constant 0 : index
    %c0_6 = arith.constant 0 : index
    %6 = vector.load %arg3[%c0_5, %c0_6] : memref<64x64xf32, #tpu.memory_space<vmem>>, vector<64x64xf32>
    %cst_7 = arith.constant 0.000000e+00 : f32
    %7 = vector.broadcast %cst_7 : f32 to vector<8x64xf32>
    %8 = vector.extract_strided_slice %5 {offsets = [0, 0], sizes = [8, 64], strides = [1, 1]} : vector<64x64xf32> to vector<8x64xf32>
    %cst_8 = arith.constant dense<0.000000e+00> : vector<8x64xf32>
    %9 = tpu.matmul %7, %6, %cst_8 {dimension_numbers = #tpu.dot_dimension_numbers<[1], [0], [0], [1], [0, 0, 1, 1], [], []>} : vector<8x64xf32>, vector<64x64xf32>, vector<8x64xf32> -> vector<8x64xf32>
    %10 = arith.addf %8, %9 : vector<8x64xf32>
    %11 = math.tanh %10 : vector<8x64xf32>
    %12 = vector.extract_strided_slice %5 {offsets = [8, 0], sizes = [8, 64], strides = [1, 1]} : vector<64x64xf32> to vector<8x64xf32>
    %cst_9 = arith.constant dense<0.000000e+00> : vector<8x64xf32>
    %13 = tpu.matmul %11, %6, %cst_9 {dimension_numbers = #tpu.dot_dimension_numbers<[1], [0], [0], [1], [0, 0, 1, 1], [], []>} : vector<8x64xf32>, vector<64x64xf32>, vector<8x64xf32> -> vector<8x64xf32>
    %14 = arith.addf %12, %13 : vector<8x64xf32>
    %15 = math.tanh %14 : vector<8x64xf32>
    %16 = vector.extract_strided_slice %5 {offsets = [16, 0], sizes = [8, 64], strides = [1, 1]} : vector<64x64xf32> to vector<8x64xf32>
    %cst_10 = arith.constant dense<0.000000e+00> : vector<8x64xf32>
    %17 = tpu.matmul %15, %6, %cst_10 {dimension_numbers = #tpu.dot_dimension_numbers<[1], [0], [0], [1], [0, 0, 1, 1], [], []>} : vector<8x64xf32>, vector<64x64xf32>, vector<8x64xf32> -> vector<8x64xf32>
    %18 = arith.addf %16, %17 : vector<8x64xf32>
    %19 = math.tanh %18 : vector<8x64xf32>
    %20 = vector.extract_strided_slice %5 {offsets = [24, 0], sizes = [8, 64], strides = [1, 1]} : vector<64x64xf32> to vector<8x64xf32>
    %cst_11 = arith.constant dense<0.000000e+00> : vector<8x64xf32>
    %21 = tpu.matmul %19, %6, %cst_11 {dimension_numbers = #tpu.dot_dimension_numbers<[1], [0], [0], [1], [0, 0, 1, 1], [], []>} : vector<8x64xf32>, vector<64x64xf32>, vector<8x64xf32> -> vector<8x64xf32>
    %22 = arith.addf %20, %21 : vector<8x64xf32>
    %23 = math.tanh %22 : vector<8x64xf32>
    %24 = vector.extract_strided_slice %5 {offsets = [32, 0], sizes = [8, 64], strides = [1, 1]} : vector<64x64xf32> to vector<8x64xf32>
    %cst_12 = arith.constant dense<0.000000e+00> : vector<8x64xf32>
    %25 = tpu.matmul %23, %6, %cst_12 {dimension_numbers = #tpu.dot_dimension_numbers<[1], [0], [0], [1], [0, 0, 1, 1], [], []>} : vector<8x64xf32>, vector<64x64xf32>, vector<8x64xf32> -> vector<8x64xf32>
    %26 = arith.addf %24, %25 : vector<8x64xf32>
    %27 = math.tanh %26 : vector<8x64xf32>
    %28 = vector.extract_strided_slice %5 {offsets = [40, 0], sizes = [8, 64], strides = [1, 1]} : vector<64x64xf32> to vector<8x64xf32>
    %cst_13 = arith.constant dense<0.000000e+00> : vector<8x64xf32>
    %29 = tpu.matmul %27, %6, %cst_13 {dimension_numbers = #tpu.dot_dimension_numbers<[1], [0], [0], [1], [0, 0, 1, 1], [], []>} : vector<8x64xf32>, vector<64x64xf32>, vector<8x64xf32> -> vector<8x64xf32>
    %30 = arith.addf %28, %29 : vector<8x64xf32>
    %31 = math.tanh %30 : vector<8x64xf32>
    %32 = vector.extract_strided_slice %5 {offsets = [48, 0], sizes = [8, 64], strides = [1, 1]} : vector<64x64xf32> to vector<8x64xf32>
    %cst_14 = arith.constant dense<0.000000e+00> : vector<8x64xf32>
    %33 = tpu.matmul %31, %6, %cst_14 {dimension_numbers = #tpu.dot_dimension_numbers<[1], [0], [0], [1], [0, 0, 1, 1], [], []>} : vector<8x64xf32>, vector<64x64xf32>, vector<8x64xf32> -> vector<8x64xf32>
    %34 = arith.addf %32, %33 : vector<8x64xf32>
    %35 = math.tanh %34 : vector<8x64xf32>
    %36 = vector.extract_strided_slice %5 {offsets = [56, 0], sizes = [8, 64], strides = [1, 1]} : vector<64x64xf32> to vector<8x64xf32>
    %cst_15 = arith.constant dense<0.000000e+00> : vector<8x64xf32>
    %37 = tpu.matmul %35, %6, %cst_15 {dimension_numbers = #tpu.dot_dimension_numbers<[1], [0], [0], [1], [0, 0, 1, 1], [], []>} : vector<8x64xf32>, vector<64x64xf32>, vector<8x64xf32> -> vector<8x64xf32>
    %38 = arith.addf %36, %37 : vector<8x64xf32>
    %39 = math.tanh %38 : vector<8x64xf32>
    %c0_16 = arith.constant 0 : index
    %c0_17 = arith.constant 0 : index
    %40 = vector.load %arg5[%c0_16, %c0_17] : memref<64x10xf32, #tpu.memory_space<vmem>>, vector<64x10xf32>
    %cst_18 = arith.constant dense<0.000000e+00> : vector<8x10xf32>
    %41 = tpu.matmul %39, %40, %cst_18 {dimension_numbers = #tpu.dot_dimension_numbers<[1], [0], [0], [1], [0, 0, 1, 1], [], []>} : vector<8x64xf32>, vector<64x10xf32>, vector<8x10xf32> -> vector<8x10xf32>
    %c0_19 = arith.constant 0 : index
    %c0_20 = arith.constant 0 : index
    %42 = vector.load %arg6[%c0_19, %c0_20] : memref<1x10xf32, #tpu.memory_space<vmem>>, vector<1x10xf32>
    %43 = vector.broadcast %42 : vector<1x10xf32> to vector<8x10xf32>
    %44 = arith.addf %41, %43 : vector<8x10xf32>
    %c0_21 = arith.constant 0 : index
    %c0_22 = arith.constant 0 : index
    %45 = vector.load %arg7[%c0_21, %c0_22] : memref<8x10xf32, #tpu.memory_space<vmem>>, vector<8x10xf32>
    tpu.vector_store %arg7[%c0_21, %c0_22], %44 {strides = array<i32>} : memref<8x10xf32, #tpu.memory_space<vmem>>, vector<8x10xf32>,
    return
  }
  func.func @transform_0(%arg0: i32) -> (i32, i32) {
    %c0_i32 = arith.constant 0 : i32
    %c0_i32_0 = arith.constant 0 : i32
    %c0_i32_1 = arith.constant 0 : i32
    return %c0_i32, %c0_i32_0 : i32, i32
  }
  func.func @transform_1(%arg0: i32) -> (i32, i32) {
    %c0_i32 = arith.constant 0 : i32
    %c0_i32_0 = arith.constant 0 : i32
    %c0_i32_1 = arith.constant 0 : i32
    return %c0_i32, %c0_i32_0 : i32, i32
  }
  func.func @transform_2(%arg0: i32) -> (i32, i32) {
    %c0_i32 = arith.constant 0 : i32
    %c0_i32_0 = arith.constant 0 : i32
    %c0_i32_1 = arith.constant 0 : i32
    return %c0_i32, %c0_i32_0 : i32, i32
  }
  func.func @transform_3(%arg0: i32) -> (i32, i32) {
    %c0_i32 = arith.constant 0 : i32
    %c0_i32_0 = arith.constant 0 : i32
    %c0_i32_1 = arith.constant 0 : i32
    return %c0_i32, %c0_i32_0 : i32, i32
  }
  func.func @transform_4(%arg0: i32) -> (i32, i32) {
    %c0_i32 = arith.constant 0 : i32
    %c0_i32_0 = arith.constant 0 : i32
    %c0_i32_1 = arith.constant 0 : i32
    return %c0_i32, %c0_i32_0 : i32, i32
  }
  func.func @transform_5(%arg0: i32) -> (i32, i32) {
    %c0_i32 = arith.constant 0 : i32
    %c0_i32_0 = arith.constant 0 : i32
    %c0_i32_1 = arith.constant 0 : i32
    return %c0_i32, %c0_i32_0 : i32, i32
  }
  func.func @transform_6(%arg0: i32) -> (i32, i32) {
    %c0_i32 = arith.constant 0 : i32
    %c0_i32_0 = arith.constant 0 : i32
    %c0_i32_1 = arith.constant 0 : i32
    return %c0_i32, %c0_i32_0 : i32, i32
  }
}

</mosaic_0001>

<bundles_post_ra>
// kernel: tpu_custom_call.1
= control target key start
LH: loop header
LB: loop body
LE: loop exit
PB: predicated region body
PF: predicated region fallthrough
CT: control target
= control target key end

     0   :  { %vm68_vm0 = vcmask 1043456   ;;  %v1356_v3 = vmov 0.0|0.0   ;;  %vm43_vm1 = vcmask 228352   ;;  %vm1357_vm2 = vmmov 0   ;;  %s1629_s0 = inlined_call_operand.vmem [shape: f32[64,28], index: 0, kind: input, shape index: {}]   ;;  %s1630_s1 = inlined_call_operand.vmem [shape: f32[28,64], index: 1, kind: input, shape index: {}]   ;;  %s1631_s2 = inlined_call_operand.vmem [shape: f32[64,64], index: 2, kind: input, shape index: {}]   ;;  %s1632_s3 = inlined_call_operand.vmem [shape: f32[1,64], index: 3, kind: input, shape index: {}]   ;;  %s1633_s4 = inlined_call_operand.vmem [shape: f32[64,10], index: 4, kind: input, shape index: {}]   ;;  %s1634_s5 = inlined_call_operand.vmem [shape: f32[1,10], index: 5, kind: input, shape index: {}]   ;;  %s1635_s6 = inlined_call_operand.hbm [shape: f32[8,10], index: 6, kind: output, shape index: {}]  }
   0x1   :  { %v177_v0 = vld [vmem:[%s1631_s2] sm:$0xff]  ;;  %v178_v1 = vld [vmem:[%s1631_s2 + $0x8] sm:$0xff]  ;;  %1203 = vmatprep.subr.bf16.mxu1 %v1356_v3  ;;  %v179_v6 = vld [vmem:[%s1631_s2 + $0x10] sm:$0xff]  ;;  %v1358_v11 = vmov 0.0   ;;  %vm1359_vm3 = vmmov 1  }
   0x2   :  { %v32_v2 = vld [vmem:[%s1630_s1] sm:$0xff]  ;;  %v1406_v4 = vpack.c.bf16 %v178_v1, %v177_v0  ;;  %v33_v5 = vld [vmem:[%s1630_s1 + $0x8] sm:$0xff]  ;;  %v180_v7 = vld [vmem:[%s1631_s2 + $0x18] sm:$0xff]  ;;  %1038 = vmatprep.mubr.msk.f32.mxu1 %vm1357_vm2, %v1358_v11 }
   0x3   :  { %v1193_v8 = vpack.c.bf16 %v33_v5, %v32_v2  ;;  %v34_v9 = vld [vmem:[%s1630_s1 + $0x10] sm:$0xff]  ;;  %v35_v10 = vld [vmem:[%s1630_s1 + $0x18] sm:$0xf]  ;;  %v1426_v12 = vpack.c.bf16 %v180_v7, %v179_v6  ;;  %vm1198_vm4 = vmpackc.low %vm68_vm0, %vm1359_vm3 }
   0x4   :  { %1205 = vmatpush3.bf16.msra.mxu1 %v1406_v4  ;;  %v1197_v13 = vpack.c.bf16 %v35_v10, %v34_v9  ;;  %v24_v14 = vld [vmem:[%s1629_s0] sm:$0xff]  ;;  %v182_v16 = vld [vmem:[%s1631_s2 + $0x28] sm:$0xff] }
   0x5   :  { %1194 = vmatprep.subr.bf16.mxu0 %v1193_v8  ;;  %1206 = vmatprep.subr.bf16.mxu1 %v1356_v3  ;;  %v181_v15 = vld [vmem:[%s1631_s2 + $0x20] sm:$0xff] }
   0x6   :  { %1196 = vmatpush3.bf16.msra.mxu0 %v1193_v8  ;;  %1010 = vmatprep.mubr.msk.f32.mxu0 %vm43_vm1, %v24_v14 }
   0x7   :  { %11 = vsyncpa [#allocation3], 0  ;;  %1199 = vmatprep.subr.msk.bf16.mxu0 %vm1198_vm4, %v1197_v13  ;;  %v1441_v17 = vpack.c.bf16 %v182_v16, %v181_v15  ;;  %v183_v18 = vld [vmem:[%s1631_s2 + $0x30] sm:$0xff]  ;;  %v184_v19 = vld [vmem:[%s1631_s2 + $0x38] sm:$0xff]  ;;  %vm185_vm5 = vcmask 523264   ;;  %vm874_vm6 = vcmask 80896  }
   0x8   :  { %1208 = vmatpush3.bf16.msra.mxu1 %v1426_v12  ;;  %v25_v20 = vld [vmem:[%s1629_s0 + $0x8] sm:$0xff]  ;;  %v1455_v21 = vpack.c.bf16 %v184_v19, %v183_v18  ;;  %v26_v22 = vld [vmem:[%s1629_s0 + $0x10] sm:$0xff]  ;;  %v27_v23 = vld [vmem:[%s1629_s0 + $0x18] sm:$0xff] }
   0x9   :  { %1209 = vmatprep.subr.bf16.mxu1 %v1356_v3  ;;  %v28_v24 = vld [vmem:[%s1629_s0 + $0x20] sm:$0xff]  ;;  %v29_v25 = vld [vmem:[%s1629_s0 + $0x28] sm:$0xff]  ;;  %v30_v26 = vld [vmem:[%s1629_s0 + $0x30] sm:$0xff] }
   0xa   :  { %1202 = vmatpush3.bf16.msk.msra.mxu0 %vm1198_vm4, %v1197_v13  ;;  %v31_v27 = vld [vmem:[%s1629_s0 + $0x38] sm:$0xff]  ;;  %v1509_v29 = vld [vmem:[%s1632_s3] ss:$0 sm:$0xff]  ;;  %v787_v5 = vld [vmem:[%s1633_s4 + $0x8] sm:$0xff] }
   0xb   :  { %1215 = vmatprep.subr.bf16.mxu0 %v1356_v3  ;;  %v789_v13 = vld [vmem:[%s1633_s4 + $0x18] sm:$0xff]  ;;  %v790_v15 = vld [vmem:[%s1633_s4 + $0x20] sm:$0xff]  ;;  %v791_v16 = vld [vmem:[%s1633_s4 + $0x28] sm:$0xff] }
   0xc   :  { %1211 = vmatpush3.bf16.msra.mxu1 %v1441_v17  ;;  %v792_v18 = vld [vmem:[%s1633_s4 + $0x30] sm:$0xff]  ;;  %v793_v19 = vld [vmem:[%s1633_s4 + $0x38] sm:$0xff] }
   0xd   :  { %1011 = vmatmul.mubr.msk.f32.vlgmr.msra.gmra.mrb[0].mxu0 %vm43_vm1, %v25_v20  ;;  %1212 = vmatprep.subr.bf16.mxu1 %v1356_v3  ;;  %v1309_v20 = vpack.c.bf16 %v793_v19, %v792_v18 }
   0xe   :  { %1217 = vmatpush3.bf16.msra.mxu0 %v1406_v4  ;;  %1013 = vmatprep.mubr.msk.f32.mxu0 %vm43_vm1, %v26_v22 }
   0xf   :  { %1218 = vmatprep.subr.bf16.mxu0 %v1356_v3 }
  0x10   :  { %1214 = vmatpush3.bf16.msra.mxu1 %v1455_v21 }
  0x11   :  { %1227 = vmatprep.subr.bf16.mxu1 %v1356_v3  ;;  %1014 = vmatmul.mubr.msk.f32.gmra.mrb[2].mxu0 %vm43_vm1, %v27_v23 }
  0x12   :  { %1220 = vmatpush3.bf16.msra.mxu0 %v1426_v12  ;;  %1016 = vmatprep.mubr.msk.f32.mxu0 %vm43_vm1, %v28_v24 }
  0x13   :  { %1039 = vmatmul.mubr.f32.vlgmr.msra.gmra.mrb[0].mxu1 %v1358_v11  ;;  %1221 = vmatprep.subr.bf16.mxu0 %v1356_v3 }
  0x14   :  { %1229 = vmatpush3.bf16.msra.mxu1 %v1406_v4  ;;  %1076 = vmatprep.mubr.msk.f32.mxu1 %vm1357_vm2, %v1358_v11 }
  0x15   :  { %1230 = vmatprep.subr.bf16.mxu1 %v1356_v3  ;;  %1017 = vmatmul.mubr.msk.f32.gmra.mrb[4].mxu0 %vm43_vm1, %v29_v25 }
  0x16   :  { %1223 = vmatpush3.bf16.msra.mxu0 %v1441_v17  ;;  %1019 = vmatprep.mubr.msk.f32.mxu0 %vm43_vm1, %v30_v26  ;;  %v907_v26 = vld [vmem:[%s1634_s5] ss:$0 sm:$0xff] }
  0x17   :  { %1224 = vmatprep.subr.bf16.mxu0 %v1356_v3 }
  0x18   :  { %1232 = vmatpush3.bf16.msra.mxu1 %v1426_v12 }
  0x19   :  { %1233 = vmatprep.subr.bf16.mxu1 %v1356_v3  ;;  %1020 = vmatmul.mubr.msk.f32.gmra.mrb[6].mxu0 %vm43_vm1, %v31_v27 }
  0x1a   :  { %1226 = vmatpush3.bf16.msra.mxu0 %v1455_v21  ;;  %1057 = vmatprep.mubr.msk.f32.mxu0 %vm1357_vm2, %v1358_v11 }
  0x1b   :  { %1239 = vmatprep.subr.bf16.mxu0 %v1356_v3 }
  0x1c   :  { %1235 = vmatpush3.bf16.msra.mxu1 %v1441_v17 }
  0x1d   :  { %1236 = vmatprep.subr.bf16.mxu1 %v1356_v3 }
  0x20   :  { %1238 = vmatpush3.bf16.msra.mxu1 %v1455_v21 }
  0x21   :  { %1251 = vmatprep.subr.bf16.mxu1 %v1356_v3 }
  0xe0   :  { %v1012_v28 = vpop.f32.mrb[0].mxu0 }
  0xe1   :  { %v138_v30 = vpop.f32.mrb[1].mxu0  ;;  %v144_v42 = vadd.f32 %v1012_v28, %v1509_v29 }
  0xe2   :  { %v139_v31 = vadd.f32 %v1509_v29, %v138_v30 }
  0xe4   :  { %v1015_v36 = vpop.f32.mrb[2].mxu0 }
  0xe5   :  { %v148_v37 = vpop.f32.mrb[3].mxu0  ;;  %v154_v52 = vadd.f32 %v1015_v36, %v1509_v29 }
  0xe6   :  { %v255_v32 = vpop.f32.mrb[0].mxu1  ;;  %v149_v47 = vadd.f32 %v1509_v29, %v148_v37 }
  0xe7   :  { %v259_v33 = vadd.f32 %v255_v32, %v139_v31  ;;  %v1040_v34 = vpop.f32.mrb[1].mxu1 }
  0xe8   :  { %v1523_v38 = vpop.f32.mrb[4].mxu0 }
  0xe9   :  { %1316 = vtanh.f32 %v259_v33  ;;  %v158_v39 = vpop.f32.mrb[5].mxu0  ;;  %v164_v62 = vadd.f32 %v1523_v38, %v1509_v29 }
  0xea   :  { %v159_v57 = vadd.f32 %v1509_v29, %v158_v39 }
  0xec   :  { %v1525_v40 = vpop.f32.mrb[6].mxu0 }
  0xed   :  { %v1527_v41 = vpop.f32.mrb[7].mxu0 }
  0xee   :  { %v169_v7 = vadd.f32 %v1509_v29, %v1527_v41 }
  0xf3   :  { %v1317_v35 = vpop.eup %1316 }
  0xf4   :  { %1058 = vmatmul.mubr.msk.f32.vlgmr.msra.gmra.mrb[8].mxu0 %vm185_vm5, %v1317_v35 }
  0xf5   :  { %1241 = vmatpush3.bf16.msra.mxu0 %v1406_v4  ;;  %1095 = vmatprep.mubr.msk.f32.mxu0 %vm1357_vm2, %v1358_v11 }
  0xf6   :  { %1242 = vmatprep.subr.bf16.mxu0 %v1356_v3 }
  0xf9   :  { %1244 = vmatpush3.bf16.msra.mxu0 %v1426_v12 }
  0xfa   :  { %1245 = vmatprep.subr.bf16.mxu0 %v1356_v3 }
  0xfd   :  { %1247 = vmatpush3.bf16.msra.mxu0 %v1441_v17 }
  0xfe   :  { %1248 = vmatprep.subr.bf16.mxu0 %v1356_v3 }
 0x101   :  { %1250 = vmatpush3.bf16.msra.mxu0 %v1455_v21 }
 0x102   :  { %1263 = vmatprep.subr.bf16.mxu0 %v1356_v3 }
 0x1c7   :  { %v330_v43 = vpop.f32.mrb[8].mxu0 }
 0x1c8   :  { %v334_v44 = vadd.f32 %v330_v43, %v144_v42  ;;  %v1059_v45 = vpop.f32.mrb[9].mxu0 }
 0x1ca   :  { %1318 = vtanh.f32 %v334_v44 }
 0x1d4   :  { %v1319_v46 = vpop.eup %1318 }
 0x1d5   :  { %1077 = vmatmul.mubr.msk.f32.vlgmr.msra.gmra.mrb[2].mxu1 %vm185_vm5, %v1319_v46 }
 0x1d6   :  { %1253 = vmatpush3.bf16.msra.mxu1 %v1406_v4  ;;  %1114 = vmatprep.mubr.msk.f32.mxu1 %vm1357_vm2, %v1358_v11 }
 0x1d7   :  { %1254 = vmatprep.subr.bf16.mxu1 %v1356_v3 }
 0x1da   :  { %1256 = vmatpush3.bf16.msra.mxu1 %v1426_v12 }
 0x1db   :  { %1257 = vmatprep.subr.bf16.mxu1 %v1356_v3 }
 0x1de   :  { %1259 = vmatpush3.bf16.msra.mxu1 %v1441_v17 }
 0x1df   :  { %1260 = vmatprep.subr.bf16.mxu1 %v1356_v3 }
 0x1e2   :  { %1262 = vmatpush3.bf16.msra.mxu1 %v1455_v21 }
 0x1e3   :  { %1275 = vmatprep.subr.bf16.mxu1 %v1356_v3 }
 0x2a8   :  { %v405_v48 = vpop.f32.mrb[2].mxu1 }
 0x2a9   :  { %v409_v49 = vadd.f32 %v405_v48, %v149_v47  ;;  %v1078_v50 = vpop.f32.mrb[3].mxu1 }
 0x2ab   :  { %1320 = vtanh.f32 %v409_v49 }
 0x2b5   :  { %v1321_v51 = vpop.eup %1320 }
 0x2b6   :  { %1096 = vmatmul.mubr.msk.f32.vlgmr.msra.gmra.mrb[10].mxu0 %vm185_vm5, %v1321_v51 }
 0x2b7   :  { %1265 = vmatpush3.bf16.msra.mxu0 %v1406_v4  ;;  %1133 = vmatprep.mubr.msk.f32.mxu0 %vm1357_vm2, %v1358_v11 }
 0x2b8   :  { %1266 = vmatprep.subr.bf16.mxu0 %v1356_v3 }
 0x2bb   :  { %1268 = vmatpush3.bf16.msra.mxu0 %v1426_v12 }
 0x2bc   :  { %1269 = vmatprep.subr.bf16.mxu0 %v1356_v3 }
 0x2bf   :  { %1271 = vmatpush3.bf16.msra.mxu0 %v1441_v17 }
 0x2c0   :  { %1272 = vmatprep.subr.bf16.mxu0 %v1356_v3 }
 0x2c3   :  { %1274 = vmatpush3.bf16.msra.mxu0 %v1455_v21 }
 0x2c4   :  { %1287 = vmatprep.subr.bf16.mxu0 %v1356_v3 }
 0x389   :  { %v480_v53 = vpop.f32.mrb[10].mxu0 }
 0x38a   :  { %v484_v54 = vadd.f32 %v480_v53, %v154_v52  ;;  %v1097_v55 = vpop.f32.mrb[11].mxu0 }
 0x38c   :  { %1322 = vtanh.f32 %v484_v54 }
 0x396   :  { %v1323_v56 = vpop.eup %1322 }
 0x397   :  { %1115 = vmatmul.mubr.msk.f32.vlgmr.msra.gmra.mrb[4].mxu1 %vm185_vm5, %v1323_v56 }
 0x398   :  { %1277 = vmatpush3.bf16.msra.mxu1 %v1406_v4  ;;  %1152 = vmatprep.mubr.msk.f32.mxu1 %vm1357_vm2, %v1358_v11 }
 0x399   :  { %1278 = vmatprep.subr.bf16.mxu1 %v1356_v3 }
 0x39c   :  { %1280 = vmatpush3.bf16.msra.mxu1 %v1426_v12 }
 0x39d   :  { %1281 = vmatprep.subr.bf16.mxu1 %v1356_v3 }
 0x3a0   :  { %1283 = vmatpush3.bf16.msra.mxu1 %v1441_v17 }
 0x3a1   :  { %1284 = vmatprep.subr.bf16.mxu1 %v1356_v3 }
 0x3a4   :  { %1286 = vmatpush3.bf16.msra.mxu1 %v1455_v21 }
 0x3a5   :  { %1299 = vmatprep.subr.bf16.mxu1 %v1356_v3 }
 0x46a   :  { %v555_v58 = vpop.f32.mrb[4].mxu1 }
 0x46b   :  { %v559_v59 = vadd.f32 %v555_v58, %v159_v57  ;;  %v1116_v60 = vpop.f32.mrb[5].mxu1 }
 0x46d   :  { %1324 = vtanh.f32 %v559_v59 }
 0x477   :  { %v1325_v61 = vpop.eup %1324 }
 0x478   :  { %1134 = vmatmul.mubr.msk.f32.vlgmr.msra.gmra.mrb[12].mxu0 %vm185_vm5, %v1325_v61 }
 0x479   :  { %1289 = vmatpush3.bf16.msra.mxu0 %v1406_v4  ;;  %1171 = vmatprep.mubr.msk.f32.mxu0 %vm1357_vm2, %v1358_v11  ;;  %v786_v4 = vld [vmem:[%s1633_s4] sm:$0xff] }
 0x47a   :  { %1290 = vmatprep.subr.bf16.mxu0 %v1356_v3  ;;  %v1300_v6 = vpack.c.bf16 %v787_v5, %v786_v4 }
 0x47d   :  { %1292 = vmatpush3.bf16.msra.mxu0 %v1426_v12  ;;  %v788_v12 = vld [vmem:[%s1633_s4 + $0x10] sm:$0xff]  ;;  %s1360_s4 = smov [#allocation2]  }
 0x47e   :  { %1293 = vmatprep.subr.bf16.mxu0 %v1356_v3  ;;  %v1303_v14 = vpack.c.bf16 %v789_v13, %v788_v12  ;;  %s882_s27 = sshll.u32 %s1360_s4, 4  ;;  %s883_s27 = int_to_ptr.vmem [resolvable:$true] %s882_s27 }
 0x47f   :  { %s1332_s28 = scalar_lea.vmem %s883_s27, 128  ;;  %p1337_p1 = scmp.lt.s32.totalorder %s883_s27, %s883_s27 }
 0x480   :  { %p1333_p0 = scmp.ne.s32.totalorder %s883_s27, %s1332_s28  ;;  %p1338_p2 = scmp.lt.s32.totalorder %s1332_s28, %s1332_s28 }
 0x481   :  { %1295 = vmatpush3.bf16.msra.mxu0 %v1441_v17  ;;  %v1306_v17 = vpack.c.bf16 %v791_v16, %v790_v15 }
 0x482   :  { %1296 = vmatprep.subr.bf16.mxu0 %v1356_v3  ;;  %p1339_p3 = por %p1338_p2, %p1337_p1 }
 0x484   :  { %p1340_p4 = pnand %p1339_p3, %p1333_p0 }
 0x485   :  { %1298 = vmatpush3.bf16.msra.mxu0 %v1455_v21  ;;  %v174_v21 = vadd.f32 %v1525_v40, %v1509_v29 }
 0x54b   :  { %v630_v63 = vpop.f32.mrb[12].mxu0 }
 0x54c   :  { %v634_v0 = vadd.f32 %v630_v63, %v164_v62  ;;  %v1135_v1 = vpop.f32.mrb[13].mxu0 }
 0x54e   :  { %1326 = vtanh.f32 %v634_v0 }
 0x558   :  { %v1327_v2 = vpop.eup %1326 }
 0x559   :  { %1153 = vmatmul.mubr.msk.f32.vlgmr.msra.gmra.mrb[6].mxu1 %vm185_vm5, %v1327_v2 }
 0x55a   :  { %1190 = vmatprep.mubr.msk.f32.mxu1 %vm1357_vm2, %v1358_v11  ;;  %1301 = vmatpush3.bf16.msra.mxu1 %v1300_v6 }
 0x55b   :  { %1302 = vmatprep.subr.bf16.mxu1 %v1356_v3 }
 0x55e   :  { %1304 = vmatpush3.bf16.msra.mxu1 %v1303_v14 }
 0x55f   :  { %1305 = vmatprep.subr.bf16.mxu1 %v1356_v3 }
 0x562   :  { %1307 = vmatpush3.bf16.msra.mxu1 %v1306_v17 }
 0x563   :  { %1308 = vmatprep.subr.bf16.mxu1 %v1356_v3 }
 0x566   :  { %1310 = vmatpush3.bf16.msra.mxu1 %v1309_v20 }
 0x62c   :  { %v705_v8 = vpop.f32.mrb[6].mxu1 }
 0x62d   :  { %v709_v9 = vadd.f32 %v705_v8, %v169_v7  ;;  %v1154_v10 = vpop.f32.mrb[7].mxu1 }
 0x62f   :  { %1328 = vtanh.f32 %v709_v9 }
 0x639   :  { %v1329_v11 = vpop.eup %1328 }
 0x63a   :  { %1172 = vmatmul.mubr.msk.f32.vlgmr.msra.gmra.mrb[14].mxu0 %vm185_vm5, %v1329_v11 }
 0x70d   :  { %v780_v22 = vpop.f32.mrb[14].mxu0 }
 0x70e   :  { %v784_v23 = vadd.f32 %v780_v22, %v174_v21  ;;  %v1173_v24 = vpop.f32.mrb[15].mxu0 }
 0x710   :  { %1330 = vtanh.f32 %v784_v23 }
 0x71a   :  { %v1331_v25 = vpop.eup %1330 }
 0x71b   :  { %1191 = vmatmul.mubr.msk.f32.vlgmr.msra.gmra.mrb[8].mxu1 %vm185_vm5, %v1331_v25 }
 0x7ee   :  { %v870_v27 = vpop.f32.mrb[8].mxu1 }
 0x7ef   :  { %v871_v3 = vadd.f32 %v907_v26, %v870_v27  ;;  %v1192_v28 = vpop.f32.mrb[9].mxu1 }
 0x7f1   :  { %875 = vst.msk [vmem:[#allocation2] sm:$0xff] %vm874_vm6, %v871_v3 }
 0x7f2   :  { %1343 = shalt.err (!%p1340_p4)
}
 0x7f3   :  { %s1344_s7 = scalar_lea.hbm %s1635_s6, 128 }
 0x7f4   :  { %p1345_p5 = scmp.ne.s32.totalorder %s1635_s6, %s1344_s7  ;;  %p1348_p6 = scmp.lt.u32.totalorder %s1344_s7, %s1635_s6 }
 0x7f6   :  { %p1350_p7 = pnand %p1348_p6, %p1345_p5 }
 0x7f8   :  { %1353 = shalt.err (!%p1350_p7)
}
 0x7f9   :  { %885 = dma.vmem_to_hbm [thread:$0]  %s883_s27, 128, %s1635_s6, [#allocation3]  }
 0x7fa   :  { %1354 = dma.done.wait [#allocation3], 128  }
 0x7fb   :  { %1355 = vsyncadd [#allocation3], 4294967168 }
 0x7fc   :  { %889 = vsyncpa [#allocation3], 1 }

</bundles_post_ra>
